<compile_context>
chip_gen: v7x
topology: tpu7x:2x2x1
jax: 0.10.0
libtpu: 0.0.40
codegen_flags: <defaults>
</compile_context>

<pallas_src>
import functools

import jax
import jax.numpy as jnp
from jax.experimental import pallas as pl
from jax.experimental.pallas import tpu as pltpu


# ----------------------------- Pallas kernel --------------------------------
def _fused_audio_conv_kernel(x9_ref, w1_ref, b1_ref, w2_ref, b2_ref, o_ref, p2_ref):
    """Fused [3x3 conv (folded BN) + ReLU] x2 for one (image, row-block) grid step.

    x9_ref : (Hb+kh-1, W, kh*kw*c_in)  bf16  stage-1 im2col rows (incl. kh-1 halo rows)
    w1_ref : (kh*kw*c_in, c_mid)       bf16  folded stage-1 weights
    b1_ref : (1, c_mid)                f32   folded stage-1 bias
    w2_ref : (kh, c_out, kw*c_mid)     bf16  folded stage-2 weights, row-tap major
    b2_ref : (c_out, 1)                f32   folded stage-2 bias
    o_ref  : (c_out, Hb*W)             f32   channel-major output rows (lane-dense)
    p2_ref : (Hb+kh-1, W, kw*c_mid)    bf16  VMEM scratch: kw-packed stage-1 activation

    Invariant: p2_ref is fully rewritten every grid step (the packed value includes
    its own zero W-halo columns), so there is no cross-step scratch state and both
    grid axes can be 'parallel' (megacore-safe).
    """
    He, W, K1 = x9_ref.shape
    c_mid = w1_ref.shape[1]
    kh, c_out, kwcm = w2_ref.shape
    kw = kwcm // c_mid
    Hb = o_ref.shape[1] // W            # = He - (kh - 1)
    ph, pw = kh // 2, kw // 2

    r = pl.program_id(1)
    nb = pl.num_programs(1)

    # ---- Stage 1: single MXU matmul, K = kh*kw*c_in; f32 accumulate + f32 epilogue.
    x9 = x9_ref[...].reshape(He * W, K1)                       # free (W % 8 == 0)
    y1 = jnp.dot(x9, w1_ref[...], preferred_element_type=jnp.float32)
    y1 = jnp.maximum(y1 + b1_ref[...], 0.0)
    y1 = y1.reshape(He, W, c_mid)

    # Halo rows outside the image ('same'-padding zeros of the stage-1 activation)
    # only occur at the top of the first / bottom of the last row block.
    row = jax.lax.broadcasted_iota(jnp.int32, (He, W, c_mid), 0)
    halo = jnp.logical_or(jnp.logical_and(row < ph, r == 0),
                          jnp.logical_and(row >= He - ph, r == nb - 1))
    y1 = jnp.where(halo, 0.0, y1).astype(jnp.bfloat16)         # single bf16 cast

    # ---- Pack the kw column taps along lanes:
    #   p2[h, j, dx*c_mid + c] = y1_padded[h, j + dx - pw, c]   (zero outside [0, W))
    # One aligned full-ref store; the zero W-halo columns ride along in the value.
    zcol = jnp.zeros((He, pw, c_mid), jnp.bfloat16)
    parts = []
    for dx in range(kw):
        s = dx - pw
        if s < 0:
            parts.append(jnp.concatenate([zcol[:, :(-s), :], y1[:, :W + s, :]], axis=1))
        elif s == 0:
            parts.append(y1)
        else:
            parts.append(jnp.concatenate([y1[:, s:, :], zcol[:, :s, :]], axis=1))
    p2_ref[...] = jnp.concatenate(parts, axis=-1)

    # ---- Stage 2: kh row-tap matmuls, K = kw*c_mid, channel-major output.
    # Each tap is a free leading-dim slice + free reshape of the packed scratch
    # (no strided-window flatten), and the store's last dim is Hb*W (lane-dense).
    acc = jnp.zeros((c_out, Hb * W), jnp.float32)
    for dy in range(kh):
        patch = p2_ref[dy:dy + Hb, :, :].reshape(Hb * W, kwcm)
        acc += jax.lax.dot_general(
            w2_ref[dy], patch,
            dimension_numbers=(((1,), (1,)), ((), ())),        # contract K -> (c_out, Hb*W)
            preferred_element_type=jnp.float32)
    o_ref[...] = jnp.maximum(acc + b2_ref[...], 0.0)


def fused_conv_bn_relu_x2(x9_blocks, w1, b1, w2, b2):
    """relu(conv2(relu(conv1(x)))) over pre-blocked stage-1 im2col rows.

    x9_blocks: (B, nb, Hb+kh-1, W, kh*kw*c_in) bf16
    returns:   (B, c_out, H*W) f32, channel-major, with H = nb * Hb.
    """
    B, nb, He, W, K1 = x9_blocks.shape
    c_mid = w1.shape[1]
    kh, c_out, kwcm = w2.shape
    Hb = He - (kh - 1)
    H = nb * Hb
    return pl.pallas_call(
        _fused_audio_conv_kernel,
        out_shape=jax.ShapeDtypeStruct((B, c_out, H * W), jnp.float32),
        grid=(B, nb),
        in_specs=[
            pl.BlockSpec((None, None, He, W, K1), lambda b, r: (b, r, 0, 0, 0)),
            pl.BlockSpec((K1, c_mid), lambda b, r: (0, 0)),            # resident
            pl.BlockSpec((1, c_mid), lambda b, r: (0, 0)),
            pl.BlockSpec((kh, c_out, kwcm), lambda b, r: (0, 0, 0)),   # resident
            pl.BlockSpec((c_out, 1), lambda b, r: (0, 0)),
        ],
        out_specs=pl.BlockSpec((None, c_out, Hb * W), lambda b, r: (b, 0, r)),
        scratch_shapes=[pltpu.VMEM((He, W, kwcm), jnp.bfloat16)],
        compiler_params=pltpu.CompilerParams(
            dimension_semantics=("parallel", "parallel")),   # B and row blocks -> 2 TCs
    )(x9_blocks, w1, b1, w2, b2)


# ------------------------------ JAX glue -------------------------------------
def _im2col_row_blocks(x_nchw, kh, kw, row_block):
    """NCHW f32 -> (B, nb, Hb+kh-1, W, kh*kw*C) bf16 stage-1 im2col row blocks.

    The kh//2 extra rows on each side hold zero patches; the kernel masks the
    corresponding stage-1 activation rows to exact zero ('same'-padding halo).
    """
    B, C, H, W = x_nchw.shape
    ph, pw = kh // 2, kw // 2
    x = jnp.transpose(x_nchw, (0, 2, 3, 1)).astype(jnp.bfloat16)       # NHWC, bf16
    xp = jnp.pad(x, ((0, 0), (ph, ph), (pw, pw), (0, 0)))
    taps = [xp[:, dy:dy + H, dx:dx + W, :] for dy in range(kh) for dx in range(kw)]
    x9 = jnp.concatenate(taps, axis=-1)                                # (B, H, W, kh*kw*C)
    x9 = jnp.pad(x9, ((0, 0), (ph, ph), (0, 0), (0, 0)))               # +(kh-1) halo rows
    nb = H // row_block
    blocks = [x9[:, r * row_block: r * row_block + row_block + (kh - 1)]
              for r in range(nb)]
    return jnp.stack(blocks, axis=1)                # (B, nb, Hb+kh-1, W, kh*kw*C)


def _fold_bn(w_oihw, bn, eps=1e-5):
    """Fold eval-mode BatchNorm into the preceding conv (scale + shift)."""
    gamma, beta, mean, var = bn
    scale = gamma / jnp.sqrt(var + eps)
    w = w_oihw * scale[:, None, None, None]
    b = beta - mean * scale
    return w, b


class AudioClassifyPallas:
    """Synthetic AudioClassify: forward(audio_clip) -> (feature_map,)."""

    def __init__(self, c_in=4, c_mid=32, c_out=32, kh=3, kw=3, row_block=8, key=None):
        if key is None:
            key = jax.random.PRNGKey(42)
        k1, k2 = jax.random.split(key)
        fan1 = c_in * kh * kw
        fan2 = c_mid * kh * kw
        # Deterministic synthetic params (Kaiming-ish conv weights, fresh eval BN).
        self.w1 = jax.random.normal(k1, (c_mid, c_in, kh, kw), jnp.float32) * (2.0 / fan1) ** 0.5
        self.w2 = jax.random.normal(k2, (c_out, c_mid, kh, kw), jnp.float32) * (2.0 / fan2) ** 0.5
        self.bn1 = (jnp.ones((c_mid,)), jnp.zeros((c_mid,)),
                    jnp.zeros((c_mid,)), jnp.ones((c_mid,)))
        self.bn2 = (jnp.ones((c_out,)), jnp.zeros((c_out,)),
                    jnp.zeros((c_out,)), jnp.ones((c_out,)))
        self.kh, self.kw = kh, kw
        self.c_in, self.c_mid, self.c_out = c_in, c_mid, c_out
        # For real spectrograms pick 32-128 rows per block; 8 keeps the toy test
        # exercising the row-tiled path while staying lane-dense (Hb*W % 128 == 0).
        self.row_block = row_block

        # --- Fold eval-mode BN and pre-pack weights ONCE (hoisted out of forward).
        w1f, b1 = _fold_bn(self.w1, self.bn1)
        w2f, b2 = _fold_bn(self.w2, self.bn2)
        # Stage 1: rows ordered (dy*kw + dx)*c_in + ci, matching the im2col columns.
        self.w1_packed = jnp.transpose(w1f, (2, 3, 1, 0)).reshape(
            kh * kw * c_in, c_mid).astype(jnp.bfloat16)
        self.b1_packed = b1.reshape(1, c_mid).astype(jnp.float32)
        # Stage 2: (kh, c_out, kw*c_mid), last axis ordered dx*c_mid + ci.
        self.w2_packed = jnp.transpose(w2f, (2, 0, 3, 1)).reshape(
            kh, c_out, kw * c_mid).astype(jnp.bfloat16)
        self.b2_packed = b2.reshape(c_out, 1).astype(jnp.float32)

    @functools.partial(jax.jit, static_argnums=0)
    def forward(self, audio_clip):
        # audio_clip: NCHW [B, C_in, F, T] (frequency x time spectrogram)
        B, _, H, W = audio_clip.shape
        assert W % 8 == 0, "time axis must be a multiple of 8 (sublane tiling)"
        # Row-block size: lane-dense output tiles need (Hb * W) % 128 == 0.
        Hb = self.row_block
        if H % Hb != 0 or (Hb * W) % 128 != 0:
            Hb = H                                   # fall back to one block per image
        x9_blocks = _im2col_row_blocks(audio_clip, self.kh, self.kw, Hb)
        out = fused_conv_bn_relu_x2(x9_blocks, self.w1_packed, self.b1_packed,
                                    self.w2_packed, self.b2_packed)
        # Channel-major kernel output -> NCHW is a free metadata reshape.
        feat = out.reshape(B, self.c_out, H, W)
        # Match AudioClassify.forward: return a 1-tuple of the feature map.
        return (feat,)


def _reference_forward(model, x):
    """Pure-JAX reference (lax.conv) with matched bf16 operand rounding."""
    def stage(x_bf16, w_oihw, bn):
        gamma, beta, mean, var = bn
        scale = gamma / jnp.sqrt(var + 1e-5)
        w = (w_oihw * scale[:, None, None, None]).astype(jnp.bfloat16)
        y = jax.lax.conv_general_dilated(
            x_bf16, w, window_strides=(1, 1), padding="SAME",
            dimension_numbers=("NCHW", "OIHW", "NCHW"),
            preferred_element_type=jnp.float32)
        shift = (beta - mean * scale)[None, :, None, None]
        return jnp.maximum(y + shift, 0.0)

    y1 = stage(x.astype(jnp.bfloat16), model.w1, model.bn1)
    y2 = stage(y1.astype(jnp.bfloat16), model.w2, model.bn2)
    return y2


if __name__ == "__main__":
    key = jax.random.PRNGKey(0)
    B, C_in, F, T = 2, 4, 16, 16          # small spectrogram-like audio clip
    audio_clip = jax.random.normal(key, (B, C_in, F, T), jnp.float32)

    model = AudioClassifyPallas(c_in=C_in, c_mid=32, c_out=32, row_block=8)
    (feat,) = model.forward(audio_clip)
    feat = jax.block_until_ready(feat)

    ref = _reference_forward(model, audio_clip)
    assert feat.shape == (B, 32, F, T), feat.shape
    max_err = float(jnp.max(jnp.abs(feat - ref)))
    assert jnp.allclose(feat, ref, atol=5e-3, rtol=5e-3), (
        f"mismatch vs reference, max abs diff = {max_err}")

    print("KERNEL_OK")
</pallas_src>

<mosaic_0001>
module attributes {stable_mosaic.version = 11 : i64} {
  func.func @_fused_audio_conv_kernel(%arg0: i32, %arg1: i32, %arg2: memref<1x1x10x16x36xbf16, #tpu.memory_space<vmem>>, %arg3: memref<36x32xbf16, #tpu.memory_space<vmem>>, %arg4: memref<1x32xf32, #tpu.memory_space<vmem>>, %arg5: memref<3x32x96xbf16, #tpu.memory_space<vmem>>, %arg6: memref<32x1xf32, #tpu.memory_space<vmem>>, %arg7: memref<1x32x128xf32, #tpu.memory_space<vmem>>, %arg8: memref<10x16x96xbf16, #tpu.memory_space<vmem>>) attributes {dimension_semantics = [#tpu.dimension_semantics<parallel>, #tpu.dimension_semantics<parallel>], iteration_bounds = array<i64: 2, 2>, scalar_prefetch = 0 : i64, scratch_operands = 1 : i64, tpu.core_type = #tpu.core_type<tc>, window_params = [{transform_indices = @transform_0, window_bounds = array<i64: 1, 1, 10, 16, 36>}, {pipeline_mode = #tpu.pipeline_mode<synchronous>, transform_indices = @transform_1, window_bounds = array<i64: 36, 32>}, {pipeline_mode = #tpu.pipeline_mode<synchronous>, transform_indices = @transform_2, window_bounds = array<i64: 1, 32>}, {pipeline_mode = #tpu.pipeline_mode<synchronous>, transform_indices = @transform_3, window_bounds = array<i64: 3, 32, 96>}, {pipeline_mode = #tpu.pipeline_mode<synchronous>, transform_indices = @transform_4, window_bounds = array<i64: 32, 1>}, {transform_indices = @transform_5, window_bounds = array<i64: 1, 32, 128>}]} {
    %c0 = arith.constant 0 : index
    %c0_0 = arith.constant 0 : index
    %c0_1 = arith.constant 0 : index
    %c0_2 = arith.constant 0 : index
    %c0_3 = arith.constant 0 : index
    %0 = vector.load %arg2[%c0, %c0_0, %c0_1, %c0_2, %c0_3] : memref<1x1x10x16x36xbf16, #tpu.memory_space<vmem>>, vector<1x1x10x16x36xbf16>
    %1 = vector.shape_cast %0 : vector<1x1x10x16x36xbf16> to vector<10x16x36xbf16>
    %2 = vector.shape_cast %1 : vector<10x16x36xbf16> to vector<160x36xbf16>
    %c0_4 = arith.constant 0 : index
    %c0_5 = arith.constant 0 : index
    %3 = vector.load %arg3[%c0_4, %c0_5] : memref<36x32xbf16, #tpu.memory_space<vmem>>, vector<36x32xbf16>
    %cst = arith.constant dense<0.000000e+00> : vector<160x32xf32>
    %4 = tpu.matmul %2, %3, %cst {dimension_numbers = #tpu.dot_dimension_numbers<[1], [0], [0], [1], [0, 0, 1, 1], [], []>} : vector<160x36xbf16>, vector<36x32xbf16>, vector<160x32xf32> -> vector<160x32xf32>
    %c0_6 = arith.constant 0 : index
    %c0_7 = arith.constant 0 : index
    %5 = vector.load %arg4[%c0_6, %c0_7] : memref<1x32xf32, #tpu.memory_space<vmem>>, vector<1x32xf32>
    %6 = vector.broadcast %5 : vector<1x32xf32> to vector<160x32xf32>
    %7 = arith.addf %4, %6 : vector<160x32xf32>
    %cst_8 = arith.constant 0.000000e+00 : f32
    %8 = vector.broadcast %cst_8 : f32 to vector<160x32xf32>
    %9 = arith.maximumf %7, %8 : vector<160x32xf32>
    %10 = vector.shape_cast %9 : vector<160x32xf32> to vector<10x16x32xf32>
    %11 = tpu.iota {dimensions = array<i32: 0>} : vector<10x16x32xi32>
    %c1_i32 = arith.constant 1 : i32
    %12 = vector.broadcast %c1_i32 : i32 to vector<10x16x32xi32>
    %13 = arith.cmpi slt, %11, %12 : vector<10x16x32xi32>
    %c0_i32 = arith.constant 0 : i32
    %14 = arith.cmpi eq, %arg1, %c0_i32 : i32
    %15 = vector.broadcast %14 : i1 to vector<10x16x32xi1>
    %16 = arith.andi %13, %15 : vector<10x16x32xi1>
    %c9_i32 = arith.constant 9 : i32
    %17 = vector.broadcast %c9_i32 : i32 to vector<10x16x32xi32>
    %18 = arith.cmpi sge, %11, %17 : vector<10x16x32xi32>
    %c1_i32_9 = arith.constant 1 : i32
    %19 = arith.cmpi eq, %arg1, %c1_i32_9 : i32
    %20 = vector.broadcast %19 : i1 to vector<10x16x32xi1>
    %21 = arith.andi %18, %20 : vector<10x16x32xi1>
    %22 = arith.ori %16, %21 : vector<10x16x32xi1>
    %cst_10 = arith.constant 0.000000e+00 : f32
    %23 = vector.broadcast %cst_10 : f32 to vector<10x16x32xf32>
    %24 = arith.select %22, %23, %10 : vector<10x16x32xi1>, vector<10x16x32xf32>
    %25 = arith.truncf %24 : vector<10x16x32xf32> to vector<10x16x32xbf16>
    %cst_11 = arith.constant 0.000000e+00 : bf16
    %26 = vector.broadcast %cst_11 : bf16 to vector<10x1x32xbf16>
    %27 = vector.extract_strided_slice %25 {offsets = [0, 0, 0], sizes = [10, 15, 32], strides = [1, 1, 1]} : vector<10x16x32xbf16> to vector<10x15x32xbf16>
    %28 = tpu.concatenate %26, %27 in 1 : vector<10x1x32xbf16>, vector<10x15x32xbf16> -> vector<10x16x32xbf16>
    %29 = vector.extract_strided_slice %25 {offsets = [0, 1, 0], sizes = [10, 15, 32], strides = [1, 1, 1]} : vector<10x16x32xbf16> to vector<10x15x32xbf16>
    %30 = tpu.concatenate %29, %26 in 1 : vector<10x15x32xbf16>, vector<10x1x32xbf16> -> vector<10x16x32xbf16>
    %31 = tpu.concatenate %28, %25, %30 in 2 : vector<10x16x32xbf16>, vector<10x16x32xbf16>, vector<10x16x32xbf16> -> vector<10x16x96xbf16>
    %c0_12 = arith.constant 0 : index
    %c0_13 = arith.constant 0 : index
    %c0_14 = arith.constant 0 : index
    %32 = vector.load %arg8[%c0_12, %c0_13, %c0_14] : memref<10x16x96xbf16, #tpu.memory_space<vmem>>, vector<10x16x96xbf16>
    tpu.vector_store %arg8[%c0_12, %c0_13, %c0_14], %31 {strides = array<i32>} : memref<10x16x96xbf16, #tpu.memory_space<vmem>>, vector<10x16x96xbf16>,
    %cst_15 = arith.constant 0.000000e+00 : f32
    %33 = vector.broadcast %cst_15 : f32 to vector<32x128xf32>
    %c0_16 = arith.constant 0 : index
    %c0_17 = arith.constant 0 : index
    %c0_18 = arith.constant 0 : index
    %34 = vector.load %arg8[%c0_16, %c0_17, %c0_18] : memref<10x16x96xbf16, #tpu.memory_space<vmem>>, vector<8x16x96xbf16>
    %35 = vector.shape_cast %34 : vector<8x16x96xbf16> to vector<128x96xbf16>
    %c0_19 = arith.constant 0 : index
    %c0_20 = arith.constant 0 : index
    %c0_21 = arith.constant 0 : index
    %36 = vector.load %arg5[%c0_19, %c0_20, %c0_21] : memref<3x32x96xbf16, #tpu.memory_space<vmem>>, vector<1x32x96xbf16>
    %37 = vector.shape_cast %36 : vector<1x32x96xbf16> to vector<32x96xbf16>
    %cst_22 = arith.constant dense<0.000000e+00> : vector<32x128xf32>
    %38 = tpu.matmul %37, %35, %cst_22 {dimension_numbers = #tpu.dot_dimension_numbers<[1], [1], [0], [0], [0, 0, 1, 0], [], []>} : vector<32x96xbf16>, vector<128x96xbf16>, vector<32x128xf32> -> vector<32x128xf32>
    %39 = arith.addf %33, %38 : vector<32x128xf32>
    %c1 = arith.constant 1 : index
    %c0_23 = arith.constant 0 : index
    %c0_24 = arith.constant 0 : index
    %40 = vector.load %arg8[%c1, %c0_23, %c0_24] : memref<10x16x96xbf16, #tpu.memory_space<vmem>>, vector<8x16x96xbf16>
    %41 = vector.shape_cast %40 : vector<8x16x96xbf16> to vector<128x96xbf16>
    %c1_25 = arith.constant 1 : index
    %c0_26 = arith.constant 0 : index
    %c0_27 = arith.constant 0 : index
    %42 = vector.load %arg5[%c1_25, %c0_26, %c0_27] : memref<3x32x96xbf16, #tpu.memory_space<vmem>>, vector<1x32x96xbf16>
    %43 = vector.shape_cast %42 : vector<1x32x96xbf16> to vector<32x96xbf16>
    %cst_28 = arith.constant dense<0.000000e+00> : vector<32x128xf32>
    %44 = tpu.matmul %43, %41, %cst_28 {dimension_numbers = #tpu.dot_dimension_numbers<[1], [1], [0], [0], [0, 0, 1, 0], [], []>} : vector<32x96xbf16>, vector<128x96xbf16>, vector<32x128xf32> -> vector<32x128xf32>
    %45 = arith.addf %39, %44 : vector<32x128xf32>
    %c2 = arith.constant 2 : index
    %c0_29 = arith.constant 0 : index
    %c0_30 = arith.constant 0 : index
    %46 = vector.load %arg8[%c2, %c0_29, %c0_30] : memref<10x16x96xbf16, #tpu.memory_space<vmem>>, vector<8x16x96xbf16>
    %47 = vector.shape_cast %46 : vector<8x16x96xbf16> to vector<128x96xbf16>
    %c2_31 = arith.constant 2 : index
    %c0_32 = arith.constant 0 : index
    %c0_33 = arith.constant 0 : index
    %48 = vector.load %arg5[%c2_31, %c0_32, %c0_33] : memref<3x32x96xbf16, #tpu.memory_space<vmem>>, vector<1x32x96xbf16>
    %49 = vector.shape_cast %48 : vector<1x32x96xbf16> to vector<32x96xbf16>
    %cst_34 = arith.constant dense<0.000000e+00> : vector<32x128xf32>
    %50 = tpu.matmul %49, %47, %cst_34 {dimension_numbers = #tpu.dot_dimension_numbers<[1], [1], [0], [0], [0, 0, 1, 0], [], []>} : vector<32x96xbf16>, vector<128x96xbf16>, vector<32x128xf32> -> vector<32x128xf32>
    %51 = arith.addf %45, %50 : vector<32x128xf32>
    %c0_35 = arith.constant 0 : index
    %c0_36 = arith.constant 0 : index
    %52 = vector.load %arg6[%c0_35, %c0_36] : memref<32x1xf32, #tpu.memory_space<vmem>>, vector<32x1xf32>
    %53 = vector.broadcast %52 : vector<32x1xf32> to vector<32x128xf32>
    %54 = arith.addf %51, %53 : vector<32x128xf32>
    %cst_37 = arith.constant 0.000000e+00 : f32
    %55 = vector.broadcast %cst_37 : f32 to vector<32x128xf32>
    %56 = arith.maximumf %54, %55 : vector<32x128xf32>
    %c0_38 = arith.constant 0 : index
    %c0_39 = arith.constant 0 : index
    %c0_40 = arith.constant 0 : index
    %57 = vector.load %arg7[%c0_38, %c0_39, %c0_40] : memref<1x32x128xf32, #tpu.memory_space<vmem>>, vector<1x32x128xf32>
    %58 = vector.shape_cast %57 : vector<1x32x128xf32> to vector<32x128xf32>
    %59 = vector.shape_cast %56 : vector<32x128xf32> to vector<1x32x128xf32>
    tpu.vector_store %arg7[%c0_38, %c0_39, %c0_40], %59 {strides = array<i32>} : memref<1x32x128xf32, #tpu.memory_space<vmem>>, vector<1x32x128xf32>,
    return
  }
  func.func @transform_0(%arg0: i32, %arg1: i32) -> (i32, i32, i32, i32, i32) {
    %c0_i32 = arith.constant 0 : i32
    %c0_i32_0 = arith.constant 0 : i32
    %c0_i32_1 = arith.constant 0 : i32
    %c0_i32_2 = arith.constant 0 : i32
    return %arg0, %arg1, %c0_i32, %c0_i32_0, %c0_i32_1 : i32, i32, i32, i32, i32
  }
  func.func @transform_1(%arg0: i32, %arg1: i32) -> (i32, i32) {
    %c0_i32 = arith.constant 0 : i32
    %c0_i32_0 = arith.constant 0 : i32
    %c0_i32_1 = arith.constant 0 : i32
    return %c0_i32, %c0_i32_0 : i32, i32
  }
  func.func @transform_2(%arg0: i32, %arg1: i32) -> (i32, i32) {
    %c0_i32 = arith.constant 0 : i32
    %c0_i32_0 = arith.constant 0 : i32
    %c0_i32_1 = arith.constant 0 : i32
    return %c0_i32, %c0_i32_0 : i32, i32
  }
  func.func @transform_3(%arg0: i32, %arg1: i32) -> (i32, i32, i32) {
    %c0_i32 = arith.constant 0 : i32
    %c0_i32_0 = arith.constant 0 : i32
    %c0_i32_1 = arith.constant 0 : i32
    %c0_i32_2 = arith.constant 0 : i32
    return %c0_i32, %c0_i32_0, %c0_i32_1 : i32, i32, i32
  }
  func.func @transform_4(%arg0: i32, %arg1: i32) -> (i32, i32) {
    %c0_i32 = arith.constant 0 : i32
    %c0_i32_0 = arith.constant 0 : i32
    %c0_i32_1 = arith.constant 0 : i32
    return %c0_i32, %c0_i32_0 : i32, i32
  }
  func.func @transform_5(%arg0: i32, %arg1: i32) -> (i32, i32, i32) {
    %c0_i32 = arith.constant 0 : i32
    %c0_i32_0 = arith.constant 0 : i32
    return %arg0, %c0_i32, %arg1 : i32, i32, i32
  }
}

</mosaic_0001>

<bundles_post_ra>
// kernel: forward.1
= control target key start
LH: loop header
LB: loop body
LE: loop exit
PB: predicated region body
PF: predicated region fallthrough
CT: control target
= control target key end

     0   :  { %s1684_s18 = smov 0   ;;  %s1686_s19 = smov 0   ;;  %s2055_s0 = inlined_call_operand.vmem [shape: bf16[2,2,10,16,36], index: 0, kind: input, shape index: {}]   ;;  %s2056_s1 = inlined_call_operand.vmem [shape: bf16[36,32], index: 1, kind: input, shape index: {}]   ;;  %s2057_s2 = inlined_call_operand.vmem [shape: f32[1,32], index: 2, kind: input, shape index: {}]   ;;  %s2058_s3 = inlined_call_operand.vmem [shape: bf16[3,32,96], index: 3, kind: input, shape index: {}]   ;;  %s2059_s4 = inlined_call_operand.vmem [shape: f32[32,1], index: 4, kind: input, shape index: {}]   ;;  %s2060_s5 = inlined_call_operand.vmem [shape: f32[2,32,256], index: 5, kind: output, shape index: {}]  }
   0x1   :  { %s1688_s20 = smov 0   ;;  %s1690_s21 = smov 0  }
   0x2   :  { %s1692_s22 = smov 0   ;;  %s1694_s23 = smov 0  }
   0x3   :  { %s1696_s24 = smov 0  }
   0x4 LB: > { %s24_s25 = sadd.s32 1, %s1641_s22  ;;  %s27_s26 = sadd.s32 1, %s1645_s23  ;;  %s1649_s24 = sphi %s1696_s24, %s15_s24   ;;  %s1645_s23 = sphi %s1694_s23, %s2073_s23   ;;  %s1641_s22 = sphi %s1692_s22, %s2072_s22   ;;  %s1637_s21 = sphi %s1690_s21, %s2071_s21   ;;  %s1633_s20 = sphi %s1688_s20, %s2070_s20   ;;  %s1629_s19 = sphi %s1686_s19, %s2069_s19   ;;  %s1625_s18 = sphi %s1684_s18, %s2068_s18  }
   0x5   : > { %p25_p0 = scmp.ge.s32.totalorder %s24_s25, 2  ;;  %s1295_s27 = sadd.s32 4294967295, %s1649_s24  }
   0x6   : > { %p158_p1 = scmp.ne.s32.totalorder %s1629_s19, %s1625_s18  ;;  %p159_p2 = scmp.eq.s32.totalorder %s1295_s27, 3 }
   0x7   : > { %s2075_s25 = smov (%p25_p0, %s24_s25), 0  ;;  %s2077_s26 = smov (!%p25_p0, %s27_s26), %s1645_s23 }
   0x8   : > { %s144_s28 = ssub.s32 %s1641_s22, %s2075_s25  ;;  %p29_p3 = scmp.ge.s32.totalorder %s2077_s26, 2 }
   0x9   : > { %p1299_p4 = scmp.ge.s32.totalorder %s1649_s24, 1  ;;  %p1730_p5 = por %p159_p2, %p158_p1 }
   0xa   : > { %p207_p6 = scmp.lt.s32.totalorder %s1649_s24, 5  ;;  %s2079_s26 = smov (%p29_p3, %s2077_s26), 0 }
   0xb   : > { %s143_s30 = ssub.s32 %s1645_s23, %s2079_s26  ;;  %s148_s7 = sadd.s32 1, %s1629_s19 }
   0xc   : > { %p208_p7 = pnand %p1299_p4, %p207_p6  ;;  %s145_s6 = sor.u32 %s144_s28, %s143_s30 }
   0xd   : > { %p146_p8 = scmp.eq.s32.totalorder %s145_s6, 0  ;;  %v1576_v0 = vld [vmem:[%s2056_s1] sm:$0xff] (!%p208_p7)   ;;  %v1577_v1 = vld [vmem:[%s2056_s1 + $0x8] sm:$0xff] (!%p208_p7)   ;;  %p238_p9 = scmp.lt.s32.totalorder (!%p208_p7), %s1637_s21, 1  ;;  %vm376_vm0 = vcmask (!%p208_p7), 1041408   ;;  %vm345_vm1 = vcmask (!%p208_p7), 293888  }
   0xe   : > { %211 = sbr.rel (%p208_p7) target bundleno = 743 (0x2e7), region = 40  ;;  %1394 = vmatprep.subr.bf16.mxu0 (!%p208_p7), %v1576_v0  ;;  %v1578_v2 = vld [vmem:[%s2056_s1 + $0x10] ss:$0 sps:$4 sm:$0x33] (!%p208_p7)   ;;  %p240_p10 = scmp.lt.s32.totalorder (!%p208_p7), %s1633_s20, 1  ;;  %vm674_vm3 = vcmask (!%p208_p7), 1047552  }
   0xf   : > { %s1741_s8 = scalar_select %p146_p8, %s1629_s19, %s148_s7  }
  0x10   : > { %1395 = vmatpush3.bf16.msra.mxu0 (!%p208_p7), %v1576_v0  ;;  %v378_v3 = vsel (!%p208_p7), %vm376_vm0, %v1578_v2, 0  ;;  %p513_p11 = scmp.eq.s32.totalorder (!%p208_p7), %s1633_s20, 0  ;;  %v1773_v14 = vld [vmem:[%s2057_s2] ss:$0 sm:$0xff] (!%p208_p7)  ;;  %vm675_vm4 = vsmask.f32 (!%p208_p7), 7424 }
  0x11   : > { %1396 = vmatprep.subr.bf16.mxu0 (!%p208_p7), %v1577_v1  ;;  %s1651_s13 = smov (!%p208_p7), 32   ;;  %vm1787_vm5 = vmand (!%p208_p7), %vm674_vm3, %vm675_vm4  ;;  %s1652_s14 = smov (!%p208_p7), 64   ;;  %vm809_vm7 = vcmask (!%p208_p7), 785408   ;;  %vm631_vm8 = vcmask (!%p208_p7), 1040384   ;;  %vm632_vm9 = vsmask.f32 (!%p208_p7), 256 }
  0x12   : > { %p517_p12 = scmp.eq.s32.totalorder (!%p208_p7), %s1633_s20, 1  ;;  %vm1879_vm10 = vmand (!%p208_p7), %vm631_vm8, %vm632_vm9  ;;  %vm747_vm11 = vcmask (!%p208_p7), 261120   ;;  %vm778_vm12 = vcmask (!%p208_p7), 523264   ;;  %s235_s7 = sand.u32 (!%p208_p7), 1, %s1625_s18  }
  0x14   : > { %1397 = vmatpush3.bf16.msra.mxu0 (!%p208_p7), %v1577_v1 }
  0x15   : > { %s239_s15 = scalar_select %p238_p9, %s1637_s21, 1  ;;  %1488 = vmatprep.subr.msk.bf16.mxu0 %vm376_vm0, %v1578_v2 }
  0x16   : > { %s241_s16 = scalar_select %p240_p10, %s1633_s20, 1 }
  0x17   : > { %s1514_s17 = smul.u32 40, %s239_s15  ;;  %s1347_s18 = sshll.u32 (%p1730_p5), %s1637_s21, 3 }
  0x18   : > { %s1513_s27 = smul.u32 20, %s241_s16  ;;  %1399 = vmatpush3.bf16.msra.mxu0 %v378_v3  ;;  %s1175_s11 = sadd.s32 (%p1730_p5), %s1633_s20, %s1347_s18 }
  0x19   : > { %s514_s12 = scalar_select %p513_p11, 1, 0 }
  0x1a   : > { %s244_s28 = sadd.s32 %s1514_s17, %s1513_s27 }
  0x1b   : > { %s1301_s30 = sshll.u32 %s244_s28, 2  ;;  %v515_v19 = vstv %s514_s12  ;;  %s1348_s12 = sshll.u32 (%p1730_p5), %s1175_s11, 3 }
  0x1c   : > { %s246_s9 = scalar_lea.vmem %s2055_s0, %s1301_s30  ;;  %vm516_vm2 = vcmp.eq.s32.totalorder %v515_v19, 1 }
  0x1d   : > { %v1579_v4 = vld [vmem:[%s246_s9] sm:$0xff]   ;;  %v1580_v5 = vld [vmem:[%s246_s9 + $0x8] sm:$0xff]   ;;  %v1581_v6 = vld [vmem:[%s246_s9 + $0x10] sm:$0xff]   ;;  %s1817_s15 = scalar_select %p517_p12, 1, 0 }
  0x1e   : > { %1400 = vmatprep.mubr.msk.bf16.mxu0 %vm345_vm1, %v1579_v4  ;;  %v1582_v7 = vld [vmem:[%s246_s9 + $0x18] sm:$0xff]   ;;  %v1583_v8 = vld [vmem:[%s246_s9 + $0x20] sm:$0xff]   ;;  %v1584_v9 = vld [vmem:[%s246_s9 + $0x28] sm:$0xff]  }
  0x1f   : > { %1401 = vmatmul.mubr.msk.bf16.vlgmr.msra.gmra.mrb[0].mxu0 %vm345_vm1, %v1580_v5  ;;  %v1585_v10 = vld [vmem:[%s246_s9 + $0x30] sm:$0xff]   ;;  %v1586_v11 = vld [vmem:[%s246_s9 + $0x38] sm:$0xff]   ;;  %v1587_v12 = vld [vmem:[%s246_s9 + $0x40] sm:$0xff]  }
  0x20   : > { %1404 = vmatprep.mubr.msk.bf16.mxu0 %vm345_vm1, %v1581_v6  ;;  %v1588_v13 = vld [vmem:[%s246_s9 + $0x48] sm:$0xff]   ;;  %s1300_s9 = sshll.u32 %s235_s7, 5 }
  0x21   : > { %s237_s10 = scalar_lea.vmem [#allocation3], %s1300_s9 }
  0x27   : > { %1405 = vmatmul.mubr.msk.bf16.gmra.mrb[4].mxu0 %vm345_vm1, %v1582_v7 }
  0x28   : > { %1408 = vmatprep.mubr.msk.bf16.mxu0 %vm345_vm1, %v1583_v8 }
  0x2f   : > { %1409 = vmatmul.mubr.msk.bf16.gmra.mrb[8].mxu0 %vm345_vm1, %v1584_v9 }
  0x30   : > { %1412 = vmatprep.mubr.msk.bf16.mxu0 %vm345_vm1, %v1585_v10 }
  0x37   : > { %1413 = vmatmul.mubr.msk.bf16.gmra.mrb[12].mxu0 %vm345_vm1, %v1586_v11 }
  0x38   : > { %1416 = vmatprep.mubr.msk.bf16.mxu0 %vm345_vm1, %v1587_v12 }
  0x3f   : > { %1417 = vmatmul.mubr.msk.bf16.gmra.mrb[16].mxu0 %vm345_vm1, %v1588_v13 }
  0xf2   : > { %v1402_v15 = vpop.f32.mrb[0].mxu0 }
  0xf3   : > { %v423_v16 = vadd.f32 %v1402_v15, %v1773_v14  ;;  %v414_v17 = vpop.f32.mrb[1].mxu0 }
  0xf4   : > { %v415_v18 = vadd.f32 %v1773_v14, %v414_v17  ;;  %v1403_v20 = vpop.f32.mrb[2].mxu0 }
  0xf5   : > { %v426_v21 = vadd.f32 %v1403_v20, %v1773_v14  ;;  %v417_v22 = vpop.f32.mrb[3].mxu0  ;;  %v495_v25 = vmax.f32 %v423_v16, 0.0 }
  0xf6   : > { %v493_v23 = vmax.f32 %v415_v18, 0.0  ;;  %v418_v24 = vadd.f32 %v1773_v14, %v417_v22 }
  0xf7   : > { %v496_v26 = vmax.f32 %v426_v21, 0.0 }
  0xf8   : > { %v494_v27 = vmax.f32 %v418_v24, 0.0  ;;  %v521_v29 = vsel %vm516_vm2, 0.0, %v493_v23 }
  0xf9   : > { %v542_v28 = vpack.c.bf16 %v496_v26, %v495_v25 }
  0xfa   : > { %v522_v30 = vsel %vm516_vm2, 0.0, %v494_v27  ;;  %v1406_v31 = vpop.f32.mrb[4].mxu0 }
  0xfb   : > { %v562_v32 = vshll.u32 %v542_v28, 16  ;;  %v439_v33 = vadd.f32 %v1406_v31, %v1773_v14  ;;  %699 = vrot.lane.b32.xlu1 %v542_v28, %s1651_s13  ;;  %v430_v34 = vpop.f32.mrb[5].mxu0  ;;  %v541_v35 = vpack.c.bf16 %v522_v30, %v521_v29  ;;  %v559_v36 = vshrl.u32 %v542_v28, 16 }
  0xfc   : > { %v431_v37 = vadd.f32 %v1773_v14, %v430_v34  ;;  %v1407_v38 = vpop.f32.mrb[6].mxu0 }
  0xfd   : > { %v499_v39 = vmax.f32 %v439_v33, 0.0  ;;  %v442_v40 = vadd.f32 %v1407_v38, %v1773_v14  ;;  %v433_v41 = vpop.f32.mrb[7].mxu0  ;;  %697 = vrot.lane.b32.xlu0 %v541_v35, %s1651_s13  ;;  %v646_v42 = vrot.slane %v562_v32, 1  ;;  %v561_v43 = vrot.slane %v559_v36, 7 }
  0xfe   : > { %v497_v44 = vmax.f32 %v431_v37, 0.0  ;;  %v434_v45 = vadd.f32 %v1773_v14, %v433_v41  ;;  %v552_v47 = vshrl.u32 %v541_v35, 16  ;;  %v555_v48 = vshll.u32 %v541_v35, 16 }
  0xff   : > { %v500_v49 = vmax.f32 %v442_v40, 0.0  ;;  %v647_v50 = vor.u32 %v646_v42, %v559_v36  ;;  %v1791_v51 = vor.u32 %v562_v32, %v561_v43 }
 0x100   : > { %v498_v52 = vmax.f32 %v434_v45, 0.0  ;;  %v644_v53 = vrot.slane %v555_v48, 1  ;;  %v554_v54 = vrot.slane %v552_v47, 7  ;;  %v519_v45 = vstv %s1817_s15  ;;  %s1177_s15 = scalar_lea.vmem (%p1730_p5), %s2060_s5, %s1348_s12 }
 0x101   : > { %v544_v55 = vpack.c.bf16 %v500_v49, %v499_v39  ;;  %v678_v56 = vsel %vm1787_vm5, %v647_v50, 0  ;;  %vm1835_vm6 = vcmp.eq.s32.totalorder %v519_v45, 1  ;;  %v635_v46 = vsel %vm1879_vm10, 0, %v1791_v51  ;;  %v1591_v51 = vld [vmem:[%s2058_s3 + $0x10] sm:$0xff]  }
 0x102   : > { %v543_v57 = vpack.c.bf16 %v498_v52, %v497_v44  ;;  %729 = vrot.lane.b32.xlu1 %v678_v56, %s1652_s14  ;;  %v1410_v58 = vpop.f32.mrb[8].mxu0  ;;  %v645_v59 = vor.u32 %v644_v53, %v552_v47  ;;  %v1796_v60 = vor.u32 %v555_v48, %v554_v54  ;;  %1436 = vmatprep.mubr.msk.bf16.mxu0 %vm809_vm7, %v1591_v51  ;;  %v1592_v51 = vld [vmem:[%s2058_s3 + $0x18] sm:$0xff]  }
 0x103   : > { %v576_v61 = vshll.u32 %v544_v55, 16  ;;  %v455_v62 = vadd.f32 %v1410_v58, %v1773_v14  ;;  %v446_v63 = vpop.f32.mrb[9].mxu0  ;;  %v573_v0 = vshrl.u32 %v544_v55, 16 }
 0x104   : > { %v569_v1 = vshll.u32 %v543_v57, 16  ;;  %v447_v2 = vadd.f32 %v1773_v14, %v446_v63  ;;  %v1411_v3 = vpop.f32.mrb[10].mxu0  ;;  %v677_v4 = vsel %vm1787_vm5, %v645_v59, 0  ;;  %v566_v5 = vshrl.u32 %v543_v57, 16 }
 0x105   : > { %v503_v6 = vmax.f32 %v455_v62, 0.0  ;;  %v458_v7 = vadd.f32 %v1411_v3, %v1773_v14  ;;  %727 = vrot.lane.b32.xlu0 %v677_v4, %s1652_s14  ;;  %v449_v8 = vpop.f32.mrb[11].mxu0  ;;  %v575_v9 = vrot.slane %v573_v0, 7  ;;  %v650_v10 = vrot.slane %v576_v61, 1 }
 0x106   : > { %v501_v11 = vmax.f32 %v447_v2, 0.0  ;;  %v450_v12 = vadd.f32 %v1773_v14, %v449_v8  ;;  %v648_v13 = vrot.slane %v569_v1, 1  ;;  %v568_v15 = vrot.slane %v566_v5, 7 }
 0x107   : > { %v504_v16 = vmax.f32 %v458_v7, 0.0  ;;  %v1806_v17 = vor.u32 %v576_v61, %v575_v9  ;;  %v651_v20 = vor.u32 %v650_v10, %v573_v0 }
 0x108   : > { %v502_v18 = vmax.f32 %v450_v12, 0.0  ;;  %v649_v19 = vor.u32 %v648_v13, %v566_v5  ;;  %v1808_v21 = vor.u32 %v569_v1, %v568_v15 }
 0x109   : > { %v546_v22 = vpack.c.bf16 %v504_v16, %v503_v6  ;;  %701 = vrot.lane.b32.xlu0 %v543_v57, %s1651_s13  ;;  %v680_v33 = vsel %vm1787_vm5, %v651_v20, 0 }
 0x10a   : > { %v545_v23 = vpack.c.bf16 %v502_v18, %v501_v11  ;;  %v1414_v24 = vpop.f32.mrb[12].mxu0  ;;  %v679_v25 = vsel %vm1787_vm5, %v649_v19, 0 }
 0x10b   : > { %v590_v26 = vshll.u32 %v546_v22, 16  ;;  %v471_v27 = vadd.f32 %v1414_v24, %v1773_v14  ;;  %v462_v28 = vpop.f32.mrb[13].mxu0  ;;  %731 = vrot.lane.b32.xlu1 %v679_v25, %s1652_s14  ;;  %v587_v29 = vshrl.u32 %v546_v22, 16 }
 0x10c   : > { %v583_v30 = vshll.u32 %v545_v23, 16  ;;  %v463_v31 = vadd.f32 %v1773_v14, %v462_v28  ;;  %v1415_v32 = vpop.f32.mrb[14].mxu0  ;;  %v580_v34 = vshrl.u32 %v545_v23, 16 }
 0x10d   : > { %v507_v35 = vmax.f32 %v471_v27, 0.0  ;;  %v474_v36 = vadd.f32 %v1415_v32, %v1773_v14  ;;  %703 = vrot.lane.b32.xlu0 %v544_v55, %s1651_s13  ;;  %v465_v37 = vpop.f32.mrb[15].mxu0  ;;  %v589_v38 = vrot.slane %v587_v29, 7  ;;  %v654_v39 = vrot.slane %v590_v26, 1 }
 0x10e   : > { %v505_v40 = vmax.f32 %v463_v31, 0.0  ;;  %v466_v41 = vadd.f32 %v1773_v14, %v465_v37  ;;  %v582_v42 = vrot.slane %v580_v34, 7  ;;  %v652_v43 = vrot.slane %v583_v30, 1 }
 0x10f   : > { %v508_v44 = vmax.f32 %v474_v36, 0.0  ;;  %733 = vrot.lane.b32.xlu1 %v680_v33, %s1652_s14  ;;  %v1827_v47 = vor.u32 %v590_v26, %v589_v38  ;;  %v655_v50 = vor.u32 %v654_v39, %v587_v29 }
 0x110   : > { %v506_v48 = vmax.f32 %v466_v41, 0.0  ;;  %v653_v49 = vor.u32 %v652_v43, %v580_v34  ;;  %v1829_v52 = vor.u32 %v583_v30, %v582_v42  ;;  %v1589_v41 = vld [vmem:[%s2058_s3] sm:$0xff]  }
 0x111   : > { %v548_v53 = vpack.c.bf16 %v508_v44, %v507_v35  ;;  %705 = vrot.lane.b32.xlu0 %v545_v23, %s1651_s13  ;;  %v682_v2 = vsel %vm1787_vm5, %v655_v50, 0  ;;  %1456 = vmatprep.mubr.msk.bf16.mxu1 %vm809_vm7, %v1589_v41  ;;  %v634_v50 = vsel %vm1879_vm10, 0, %v1796_v60 }
 0x112   : > { %v547_v54 = vpack.c.bf16 %v506_v48, %v505_v40  ;;  %v1418_v55 = vpop.f32.mrb[16].mxu0  ;;  %v681_v56 = vsel %vm1787_vm5, %v653_v49, 0 }
 0x113   : > { %v604_v57 = vshll.u32 %v548_v53, 16  ;;  %v487_v58 = vadd.f32 %v1418_v55, %v1773_v14  ;;  %v478_v61 = vpop.f32.mrb[17].mxu0  ;;  %735 = vrot.lane.b32.xlu1 %v681_v56, %s1652_s14  ;;  %v601_v62 = vshrl.u32 %v548_v53, 16 }
 0x114   : > { %v597_v63 = vshll.u32 %v547_v54, 16  ;;  %v479_v0 = vadd.f32 %v1773_v14, %v478_v61  ;;  %v1419_v1 = vpop.f32.mrb[18].mxu0  ;;  %v594_v3 = vshrl.u32 %v547_v54, 16 }
 0x115   : > { %v511_v4 = vmax.f32 %v487_v58, 0.0  ;;  %v490_v5 = vadd.f32 %v1419_v1, %v1773_v14  ;;  %707 = vrot.lane.b32.xlu0 %v546_v22, %s1651_s13  ;;  %v481_v6 = vpop.f32.mrb[19].mxu0  ;;  %v603_v7 = vrot.slane %v601_v62, 7  ;;  %v658_v8 = vrot.slane %v604_v57, 1 }
 0x116   : > { %v509_v9 = vmax.f32 %v479_v0, 0.0  ;;  %v482_v10 = vadd.f32 %v1773_v14, %v481_v6  ;;  %v596_v11 = vrot.slane %v594_v3, 7  ;;  %v656_v12 = vrot.slane %v597_v63, 1 }
 0x117   : > { %v539_v13 = vsel %vm1835_vm6, 0.0, %v511_v4  ;;  %v512_v15 = vmax.f32 %v490_v5, 0.0  ;;  %737 = vrot.lane.b32.xlu1 %v682_v2, %s1652_s14  ;;  %v659_v16 = vor.u32 %v658_v8, %v601_v62  ;;  %v1849_v18 = vor.u32 %v604_v57, %v603_v7  ;;  %v1132_v4 = vld [vmem:[%s2059_s4 + $0x8] sm:$0xff]  ;;  %v1131_v5 = vld [vmem:[%s2059_s4] sm:$0xff] }
 0x118   : > { %v510_v19 = vmax.f32 %v482_v10, 0.0  ;;  %v657_v20 = vor.u32 %v656_v12, %v594_v3  ;;  %v1851_v22 = vor.u32 %v597_v63, %v596_v11  ;;  %v636_v57 = vsel %vm1879_vm10, 0, %v1808_v21  ;;  %v1133_v11 = vld [vmem:[%s2059_s4 + $0x10] sm:$0xff] }
 0x119   : > { %v540_v23 = vsel %vm1835_vm6, 0.0, %v512_v15  ;;  %709 = vrot.lane.b32.xlu0 %v547_v54, %s1651_s13  ;;  %v684_v26 = vsel %vm1787_vm5, %v659_v16, 0  ;;  %v637_v21 = vsel %vm1879_vm10, 0, %v1806_v17  ;;  %v1653_v17 = vmov 0   ;;  %v1134_v15 = vld [vmem:[%s2059_s4 + $0x18] sm:$0xff] }
 0x11a   : > { %v549_v14 = vpack.c.bf16 %v510_v19, %v509_v9  ;;  %v683_v24 = vsel %vm1787_vm5, %v657_v20, 0  ;;  %v550_v25 = vpack.c.bf16 %v540_v23, %v539_v13  ;;  %1575 = vset.pattern.permute.xlu1 %v1653_v17  ;;  %1574 = vset.pattern.permute.xlu0 %v1653_v17  ;;  %v638_v8 = vsel %vm1879_vm10, 0, %v1829_v52 }
 0x11b   : > { %739 = vrot.lane.b32.xlu1 %v683_v24, %s1652_s14  ;;  %v639_v19 = vsel %vm1879_vm10, 0, %v1827_v47  ;;  %v640_v47 = vsel %vm1879_vm10, 0, %v1851_v22 }
 0x11c   : > { %v611_v27 = vshll.u32 %v549_v14, 16  ;;  %v608_v28 = vshrl.u32 %v549_v14, 16  ;;  %v615_v29 = vshrl.u32 %v550_v25, 16  ;;  %v618_v30 = vshll.u32 %v550_v25, 16 }
 0x11d   : > { %711 = vrot.lane.b32.xlu0 %v548_v53, %s1651_s13 }
 0x11e   : > { %v610_v31 = vrot.slane %v608_v28, 7  ;;  %v660_v32 = vrot.slane %v611_v27, 1  ;;  %v617_v33 = vrot.slane %v615_v29, 7  ;;  %v662_v34 = vrot.slane %v618_v30, 1 }
 0x11f   : > { %741 = vrot.lane.b32.xlu1 %v684_v26, %s1652_s14 }
 0x120   : > { %v661_v35 = vor.u32 %v660_v32, %v608_v28  ;;  %v663_v36 = vor.u32 %v662_v34, %v615_v29  ;;  %v1863_v37 = vor.u32 %v611_v27, %v610_v31  ;;  %v1865_v38 = vor.u32 %v618_v30, %v617_v33 }
 0x121   : > { %713 = vrot.lane.b32.xlu0 %v549_v14, %s1651_s13  ;;  %v641_v31 = vsel %vm1879_vm10, 0, %v1849_v18 }
 0x122   : > { %v685_v39 = vsel %vm1787_vm5, %v661_v35, 0  ;;  %v686_v40 = vsel %vm1787_vm5, %v663_v36, 0  ;;  %v642_v18 = vsel %vm1879_vm10, 0, %v1863_v37 }
 0x123   : > { %743 = vrot.lane.b32.xlu1 %v685_v39, %s1652_s14 }
 0x125   : > { %715 = vrot.lane.b32.xlu0 %v550_v25, %s1651_s13 }
 0x127   : > { %745 = vrot.lane.b32.xlu1 %v686_v40, %s1652_s14 }
 0x129   : > { %1137 = vperm.xlu0 %1574, %v1131_v5  }
 0x12b   : > { %1142 = vperm.xlu1 %1575, %v1132_v4  }
 0x12d   : > { %1152 = vperm.xlu0 %1574, %v1134_v15  }
 0x12f   : > { %1147 = vperm.xlu1 %1575, %v1133_v11  }
 0x16d   : > { %v700_v43 = vpop.permute.xlu1 %699 }
 0x16e   : > { %v753_v45 = vsel %vm747_vm11, %v635_v46, %v700_v43  ;;  %v643_v46 = vsel %vm1879_vm10, 0, %v1865_v38 }
 0x16f   : > { %v698_v44 = vpop.permute.xlu0 %697 }
 0x170   : > { %v750_v53 = vsel %vm747_vm11, %v634_v50, %v698_v44 }
 0x174   : > { %v730_v48 = vpop.permute.xlu1 %729 }
 0x175   : > { %v783_v49 = vsel %vm778_vm12, %v753_v45, %v730_v48 }
 0x176   : > { %811 = vst.msk [vmem:[#allocation2 + $0x8] sm:$0xff] %vm809_vm7, %v783_v49 }
 0x177   : > { %v728_v54 = vpop.permute.xlu0 %727 }
 0x178   : > { %v780_v55 = vsel %vm778_vm12, %v750_v53, %v728_v54 }
 0x179   : > { %810 = vst.msk [vmem:[#allocation2] sm:$0xff] %vm809_vm7, %v780_v55 }
 0x17b   : > { %v702_v56 = vpop.permute.xlu0 %701 }
 0x17c   : > { %v756_v60 = vsel %vm747_vm11, %v636_v57, %v702_v56  ;;  %v1590_v56 = vld [vmem:[%s2058_s3 + $0x8] sm:$0xff]   ;;  %v1593_v57 = vld [vmem:[%s2058_s3 + $0x20] sm:$0xff]  }
 0x17d   : > { %v732_v58 = vpop.permute.xlu1 %731  ;;  %v833_v59 = vld [vmem:[#allocation2 + $0x8] sm:$0xff] }
 0x17e   : > { %v786_v61 = vsel %vm778_vm12, %v756_v60, %v732_v58  ;;  %1489 = vmatprep.subr.msk.bf16.mxu0 %vm809_vm7, %v833_v59  ;;  %v863_v62 = vsel %vm809_vm7, %v833_v59, 0 }
 0x17f   : > { %812 = vst.msk [vmem:[#allocation2 + $0x10] sm:$0xff] %vm809_vm7, %v786_v61  ;;  %v704_v63 = vpop.permute.xlu0 %703  ;;  %1421 = vmatpush3.bf16.xpose.msra.mxu0 %v863_v62 }
 0x180   : > { %v820_v0 = vld [vmem:[#allocation2] sm:$0xff]  ;;  %v759_v1 = vsel %vm747_vm11, %v637_v21, %v704_v63 }
 0x181   : > { %1497 = vmatprep.subr.msk.bf16.mxu1 %vm809_vm7, %v820_v0  ;;  %v734_v2 = vpop.permute.xlu1 %733  ;;  %v952_v3 = vsel %vm809_vm7, %v820_v0, 0 }
 0x182   : > { %v789_v6 = vsel %vm778_vm12, %v759_v1, %v734_v2  ;;  %1441 = vmatpush3.bf16.xpose.msra.mxu1 %v952_v3 }
 0x183   : > { %813 = vst.msk [vmem:[#allocation2 + $0x18] sm:$0xff] %vm809_vm7, %v789_v6  ;;  %v706_v7 = vpop.permute.xlu0 %705  ;;  %1498 = vmatprep.subr.msk.bf16.mxu1 %vm809_vm7, %v833_v59  ;;  %v1594_v59 = vld [vmem:[%s2058_s3 + $0x28] sm:$0xff]  }
 0x184   : > { %v762_v9 = vsel %vm747_vm11, %v638_v8, %v706_v7 }
 0x185   : > { %v736_v10 = vpop.permute.xlu1 %735 }
 0x186   : > { %v792_v12 = vsel %vm778_vm12, %v762_v9, %v736_v10  ;;  %v1930_v13 = vld [vmem:[#allocation2 + $0x10] sm:$0xff] }
 0x187   : > { %814 = vst.msk [vmem:[#allocation2 + $0x20] sm:$0xff] %vm809_vm7, %v792_v12  ;;  %v708_v52 = vpop.permute.xlu0 %707  ;;  %1490 = vmatprep.subr.msk.bf16.mxu0 %vm809_vm7, %v1930_v13  ;;  %v1940_v16 = vsel %vm809_vm7, %v1930_v13, 0 }
 0x188   : > { %1423 = vmatpush3.bf16.xpose.msra.mxu0 %v1940_v16  ;;  %v765_v20 = vsel %vm747_vm11, %v639_v19, %v708_v52 }
 0x189   : > { %v738_v23 = vpop.permute.xlu1 %737 }
 0x18a   : > { %v795_v14 = vsel %vm778_vm12, %v765_v20, %v738_v23  ;;  %1443 = vmatpush3.bf16.xpose.msra.mxu1 %v863_v62  ;;  %v1948_v24 = vld [vmem:[#allocation2 + $0x18] sm:$0xff] }
 0x18b   : > { %815 = vst.msk [vmem:[#allocation2 + $0x28] sm:$0xff] %vm809_vm7, %v795_v14  ;;  %v710_v25 = vpop.permute.xlu0 %709  ;;  %1499 = vmatprep.subr.msk.bf16.mxu1 %vm809_vm7, %v1930_v13  ;;  %1491 = vmatprep.subr.msk.bf16.mxu0 %vm809_vm7, %v1948_v24  ;;  %v869_v30 = vsel %vm809_vm7, %v1948_v24, 0 }
 0x18c   : > { %v768_v26 = vsel %vm747_vm11, %v640_v47, %v710_v25 }
 0x18d   : > { %v740_v27 = vpop.permute.xlu1 %739 }
 0x18e   : > { %v798_v28 = vsel %vm778_vm12, %v768_v26, %v740_v27  ;;  %v836_v32 = vld [vmem:[#allocation2 + $0x20] sm:$0xff] }
 0x18f   : > { %816 = vst.msk [vmem:[#allocation2 + $0x30] sm:$0xff] %vm809_vm7, %v798_v28  ;;  %v712_v29 = vpop.permute.xlu0 %711  ;;  %v872_v43 = vsel %vm809_vm7, %v836_v32, 0 }
 0x190   : > { %1425 = vmatpush3.bf16.xpose.msra.mxu0 %v869_v30  ;;  %v771_v33 = vsel %vm747_vm11, %v641_v31, %v712_v29 }
 0x191   : > { %v742_v22 = vpop.permute.xlu1 %741  ;;  %1492 = vmatprep.subr.msk.bf16.mxu0 %vm809_vm7, %v836_v32 }
 0x192   : > { %v801_v34 = vsel %vm778_vm12, %v771_v33, %v742_v22  ;;  %1445 = vmatpush3.bf16.xpose.msra.mxu1 %v1940_v16  ;;  %v837_v44 = vld [vmem:[#allocation2 + $0x28] sm:$0xff] }
 0x193   : > { %817 = vst.msk [vmem:[#allocation2 + $0x38] sm:$0xff] %vm809_vm7, %v801_v34  ;;  %v714_v35 = vpop.permute.xlu0 %713  ;;  %1500 = vmatprep.subr.msk.bf16.mxu1 %vm809_vm7, %v1948_v24  ;;  %v875_v49 = vsel %vm809_vm7, %v837_v44, 0 }
 0x194   : > { %v774_v36 = vsel %vm747_vm11, %v642_v18, %v714_v35 }
 0x195   : > { %v744_v39 = vpop.permute.xlu1 %743 }
 0x196   : > { %v804_v40 = vsel %vm778_vm12, %v774_v36, %v744_v39  ;;  %v838_v50 = vld [vmem:[#allocation2 + $0x30] sm:$0xff] }
 0x197   : > { %818 = vst.msk [vmem:[#allocation2 + $0x40] sm:$0xff] %vm809_vm7, %v804_v40  ;;  %v716_v41 = vpop.permute.xlu0 %715  ;;  %v878_v38 = vsel %vm809_vm7, %v838_v50, 0 }
 0x198   : > { %1427 = vmatpush3.bf16.xpose.msra.mxu0 %v872_v43  ;;  %v777_v45 = vsel %vm747_vm11, %v643_v46, %v716_v41 }
 0x199   : > { %v746_v48 = vpop.permute.xlu1 %745  ;;  %1493 = vmatprep.subr.msk.bf16.mxu0 %vm809_vm7, %v837_v44 }
 0x19a   : > { %v807_v37 = vsel %vm778_vm12, %v777_v45, %v746_v48  ;;  %1447 = vmatpush3.bf16.xpose.msra.mxu1 %v869_v30  ;;  %v839_v42 = vld [vmem:[#allocation2 + $0x38] sm:$0xff] }
 0x19b   : > { %819 = vst.msk [vmem:[#allocation2 + $0x48] sm:$0xff] %vm809_vm7, %v807_v37  ;;  %1501 = vmatprep.subr.msk.bf16.mxu1 %vm809_vm7, %v836_v32  ;;  %v881_v53 = vsel %vm809_vm7, %v839_v42, 0 }
 0x19e   : > { %v840_v54 = vld [vmem:[#allocation2 + $0x40] sm:$0xff] }
 0x19f   : > { %v884_v55 = vsel %vm809_vm7, %v840_v54, 0 }
 0x1a0   : > { %1429 = vmatpush3.bf16.xpose.msra.mxu0 %v875_v49 }
 0x1a1   : > { %1494 = vmatprep.subr.msk.bf16.mxu0 %vm809_vm7, %v838_v50 }
 0x1a2   : > { %1449 = vmatpush3.bf16.xpose.msra.mxu1 %v872_v43  ;;  %v1032_v60 = vld [vmem:[#allocation2 + $0x48] sm:$0xff] }
 0x1a3   : > { %1502 = vmatprep.subr.msk.bf16.mxu1 %vm809_vm7, %v837_v44  ;;  %v1076_v58 = vsel %vm809_vm7, %v1032_v60, 0 }
 0x1a8   : > { %1431 = vmatpush3.bf16.xpose.msra.mxu0 %v878_v38  ;;  %v1138_v1 = vpop.permute.xlu0 %1137 }
 0x1a9   : > { %1495 = vmatprep.subr.msk.bf16.mxu0 %vm809_vm7, %v839_v42 }
 0x1aa   : > { %1451 = vmatpush3.bf16.xpose.msra.mxu1 %v875_v49  ;;  %v1143_v0 = vpop.permute.xlu1 %1142 }
 0x1ab   : > { %1503 = vmatprep.subr.msk.bf16.mxu1 %vm809_vm7, %v838_v50 }
 0x1ac   : > { %v1153_v10 = vpop.permute.xlu0 %1152 }
 0x1ae   : > { %v1148_v3 = vpop.permute.xlu1 %1147 }
 0x1b0   : > { %1433 = vmatpush3.bf16.xpose.msra.mxu0 %v881_v53 }
 0x1b1   : > { %1496 = vmatprep.subr.msk.bf16.mxu0 %vm809_vm7, %v840_v54 }
 0x1b2   : > { %1453 = vmatpush3.bf16.xpose.msra.mxu1 %v878_v38 }
 0x1b3   : > { %1504 = vmatprep.subr.msk.bf16.mxu1 %vm809_vm7, %v839_v42 }
 0x1b8   : > { %1435 = vmatpush3.bf16.xpose.msra.mxu0 %v884_v55 }
 0x1ba   : > { %1455 = vmatpush3.bf16.xpose.msra.mxu1 %v881_v53 }
 0x1bb   : > { %1505 = vmatprep.subr.msk.bf16.mxu1 %vm809_vm7, %v1930_v13 }
 0x1bf   : > { %1437 = vmatmul.mubr.msk.bf16.vlgmr.msra.gmra.mrb[20].mxu0 %vm809_vm7, %v1592_v51 }
 0x1c1   : > { %1457 = vmatmul.mubr.msk.bf16.vlgmr.msra.gmra.mrb[0].mxu1 %vm809_vm7, %v1590_v56 }
 0x1c2   : > { %1461 = vmatpush3.bf16.xpose.msra.mxu1 %v1940_v16  ;;  %1476 = vmatprep.mubr.msk.bf16.mxu1 %vm809_vm7, %v1593_v57 }
 0x1c3   : > { %1506 = vmatprep.subr.msk.bf16.mxu1 %vm809_vm7, %v1948_v24 }
 0x1ca   : > { %1463 = vmatpush3.bf16.xpose.msra.mxu1 %v869_v30 }
 0x1cb   : > { %1507 = vmatprep.subr.msk.bf16.mxu1 %vm809_vm7, %v836_v32 }
 0x1d2   : > { %1465 = vmatpush3.bf16.xpose.msra.mxu1 %v872_v43 }
 0x1d3   : > { %1508 = vmatprep.subr.msk.bf16.mxu1 %vm809_vm7, %v837_v44 }
 0x1da   : > { %1467 = vmatpush3.bf16.xpose.msra.mxu1 %v875_v49 }
 0x1db   : > { %1509 = vmatprep.subr.msk.bf16.mxu1 %vm809_vm7, %v838_v50 }
 0x1e2   : > { %1469 = vmatpush3.bf16.xpose.msra.mxu1 %v878_v38 }
 0x1e3   : > { %1510 = vmatprep.subr.msk.bf16.mxu1 %vm809_vm7, %v839_v42 }
 0x1ea   : > { %1471 = vmatpush3.bf16.xpose.msra.mxu1 %v881_v53 }
 0x1eb   : > { %1511 = vmatprep.subr.msk.bf16.mxu1 %vm809_vm7, %v840_v54 }
 0x1f2   : > { %1473 = vmatpush3.bf16.xpose.msra.mxu1 %v884_v55 }
 0x1f3   : > { %1512 = vmatprep.subr.msk.bf16.mxu1 %vm809_vm7, %v1032_v60 }
 0x1fa   : > { %1475 = vmatpush3.bf16.xpose.msra.mxu1 %v1076_v58 }
 0x201   : > { %1477 = vmatmul.mubr.msk.bf16.vlgmr.msra.gmra.mrb[0].mxu1 %vm809_vm7, %v1594_v59 }
 0x292   : > { %v1438_v61 = vpop.f32.mrb[20].mxu0 }
 0x293   : > { %v920_v62 = vpop.f32.mrb[21].mxu0 }
 0x294   : > { %v1439_v63 = vpop.f32.mrb[22].mxu0 }
 0x295   : > { %v923_v21 = vpop.f32.mrb[23].mxu0 }
 0x2d4   : > { %v1478_v2 = vpop.f32.mrb[0].mxu1 }
 0x2d5   : > { %v1480_v4 = vadd.f32 %v1478_v2, %v1438_v61  ;;  %v1112_v5 = vpop.f32.mrb[1].mxu1 }
 0x2d6   : > { %v1481_v6 = vadd.f32 %v1112_v5, %v920_v62  ;;  %v1479_v17 = vpop.f32.mrb[2].mxu1 }
 0x2d7   : > { %v1157_v7 = vadd.f32 %v1480_v4, %v1148_v3  ;;  %v1482_v8 = vadd.f32 %v1479_v17, %v1439_v63  ;;  %v1115_v9 = vpop.f32.mrb[3].mxu1 }
 0x2d8   : > { %v1155_v11 = vadd.f32 %v1481_v6, %v1138_v1  ;;  %v1483_v12 = vadd.f32 %v1115_v9, %v923_v21  ;;  %1173 = sbr.rel (!%p1730_p5) target bundleno = 743 (0x2e7), region = 44 }
 0x2d9   : > { %v1161_v13 = vmax.f32 %v1157_v7, 0.0  ;;  %v1158_v15 = vadd.f32 %v1482_v8, %v1153_v10 }
 0x2da   : > { %v1159_v52 = vmax.f32 %v1155_v11, 0.0  ;;  %v1156_v16 = vadd.f32 %v1483_v12, %v1143_v0 }
 0x2db   : > { %1165 = vst [vmem:[%s237_s10 + $0x10] sm:$0xff] %v1161_v13  ;;  %v1162_v19 = vmax.f32 %v1158_v15, 0.0 }
 0x2dc   : > { %1163 = vst [vmem:[%s237_s10] sm:$0xff] %v1159_v52  ;;  %v1160_v20 = vmax.f32 %v1156_v16, 0.0 }
 0x2dd   : > { %1166 = vst [vmem:[%s237_s10 + $0x18] sm:$0xff] %v1162_v19 }
 0x2de   : > { %1164 = vst [vmem:[%s237_s10 + $0x8] sm:$0xff] %v1160_v20 }
 0x2e2   : > { %v1215_v24 = vld [vmem:[%s237_s10 + $0x10] sm:$0xff] }
 0x2e3   : > { %v1211_v23 = vld [vmem:[%s237_s10] sm:$0xff]  ;;  %1216 = vst [vmem:[%s1177_s15 + $0x20] sm:$0xff] %v1215_v24 }
 0x2e4   : > { %v1217_v25 = vld [vmem:[%s237_s10 + $0x18] sm:$0xff]  ;;  %1212 = vst [vmem:[%s1177_s15] sm:$0xff] %v1211_v23 }
 0x2e5   : > { %v1213_v14 = vld [vmem:[%s237_s10 + $0x8] sm:$0xff]  ;;  %1218 = vst [vmem:[%s1177_s15 + $0x30] sm:$0xff] %v1217_v25 }
 0x2e6   : > { %1214 = vst [vmem:[%s1177_s15 + $0x10] sm:$0xff] %v1213_v14 }
 0x2e7 PF: > { %s15_s24 = sadd.s32 1, %s1649_s24   ;;  %s2068_s18 = smov %s1629_s19 }
 0x2e8   : > { %p12_p13 = scmp.ge.s32.totalorder %s15_s24, 6   ;;  %s2069_s19 = smov %s1741_s8 }
 0x2e9   : > { %s2070_s20 = smov %s1641_s22  ;;  %s2071_s21 = smov %s1645_s23 }
 0x2ea   : > { %s2072_s22 = smov %s2075_s25  ;;  %s2073_s23 = smov %s2079_s26 }
 0x2eb   :  { %14 = sbr.rel (!%p12_p13) target bundleno = 4 (0x4), region = 112 }

</bundles_post_ra>
